<compile_context>
chip_gen: v5e
topology: v5e:2x2
jax: 0.10.0
libtpu: 0.0.40
codegen_flags: <defaults>
</compile_context>

<pallas_src>
import jax
import jax.numpy as jnp
import numpy as np
from jax.experimental import pallas as pl
from jax.experimental.pallas import tpu as pltpu

NEG_SLOPE = 0.01   # F.leaky_relu default negative slope
BIG = 1e8
BN_EPS = 1e-5


def wcompute_kernel(xi_ref, xj_ref, wid_ref,
                    w1_ref, t1_ref,
                    w2_ref, t2_ref,
                    w3_ref, t3_ref,
                    w4_ref, t4_ref,
                    wl_ref, bl_ref,
                    out_ref):
    TM, F = xi_ref.shape          # (TM, F)  row-tile of x_i
    N, _ = xj_ref.shape           # (N, F)   all x_j

    xi = xi_ref[...]
    xj = xj_ref[...]

    # Pairwise absolute differences for this row tile: d[i, j, :] = |x_i - x_j|
    d = jnp.abs(xi[:, None, :] - xj[None, :, :])          # (TM, N, F) f32
    h = d.reshape(TM * N, F).astype(jnp.bfloat16)          # bf16 matmul operand

    def block(h_bf16, w_ref, t_ref):
        # 1x1 conv (BN scale pre-folded into w) -> shift -> leaky relu, f32 math
        y = jnp.dot(h_bf16, w_ref[...], preferred_element_type=jnp.float32)
        y = y + t_ref[...]
        return jnp.where(y > 0, y, NEG_SLOPE * y)

    h = block(h, w1_ref, t1_ref).astype(jnp.bfloat16)      # F      -> 2*nf
    h = block(h, w2_ref, t2_ref).astype(jnp.bfloat16)      # 2*nf   -> 2*nf
    h = block(h, w3_ref, t3_ref).astype(jnp.bfloat16)      # 2*nf   -> nf
    h = block(h, w4_ref, t4_ref)                           # nf     -> nf   (keep f32)

    # conv2d_last (nf -> 1) as VPU multiply + lane reduction (no width-1 matmul).
    logits = jnp.sum(h * wl_ref[...], axis=-1, keepdims=True)   # (TM*N, 1)
    logits = logits.reshape(TM, N) + bl_ref[...]                # (TM, N)

    # activation == 'softmax': mask with W_id then softmax over j.
    wid = wid_ref[...]                                          # (TM, N)
    logits = logits - wid * BIG
    m = jnp.max(logits, axis=1, keepdims=True)
    e = jnp.exp(logits - m)
    p = e * pl.reciprocal(jnp.sum(e, axis=1, keepdims=True), approx=True)

    out_ref[...] = p                                            # lane-dense (TM, N)


def _pick_row_tile(n, cap=128):
    """Largest divisor of n that is <= cap and a multiple of 8 (fallback: n)."""
    if n <= cap:
        return n
    for t in range(cap, 0, -8):
        if t % 8 == 0 and n % t == 0:
            return t
    return n


def wcompute_forward(x, w_id, params, *, tm=None):
    B, N, F = x.shape
    if tm is None:
        tm = _pick_row_tile(N)
    assert N % tm == 0

    w_id3 = w_id[..., 0]                                    # (B, N, N) mask view

    weight_args = [
        params["w1"], params["t1"],
        params["w2"], params["t2"],
        params["w3"], params["t3"],
        params["w4"], params["t4"],
        params["wl"], params["bl"],
    ]

    def const_map(nd):
        return lambda b, t: (0,) * nd

    in_specs = [
        pl.BlockSpec((None, tm, F), lambda b, t: (b, t, 0)),   # x_i row tile
        pl.BlockSpec((None, N, F), lambda b, t: (b, 0, 0)),    # x_j (all rows)
        pl.BlockSpec((None, tm, N), lambda b, t: (b, t, 0)),   # W_id mask rows
    ] + [
        pl.BlockSpec(w.shape, const_map(w.ndim)) for w in weight_args
    ]

    out_specs = pl.BlockSpec((None, tm, N), lambda b, t: (b, t, 0))

    sm = pl.pallas_call(
        wcompute_kernel,
        out_shape=jax.ShapeDtypeStruct((B, N, N), jnp.float32),
        grid_spec=pltpu.PrefetchScalarGridSpec(
            num_scalar_prefetch=0,
            grid=(B, N // tm),
            in_specs=in_specs,
            out_specs=out_specs,
        ),
        compiler_params=pltpu.CompilerParams(
            dimension_semantics=("parallel", "parallel"),
            vmem_limit_bytes=48 * 1024 * 1024,   # headroom under v7x 64 MiB VMEM
        ),
    )(x, x, w_id3, *weight_args)

    # operator == 'J2': concat([W_id, softmaxed W], axis=-1) — pure passthrough,
    # done in the wrapper so the kernel output stays lane-dense.
    return jnp.concatenate([w_id, sm[..., None]], axis=-1)


def make_params(key, input_features, nf, ratio=(2, 2, 1, 1)):
    """Deterministic synthetic parameters.

    Returns (kernel_params, raw_params):
      kernel_params: BN scale folded into bf16 conv weights + f32 shifts.
      raw_params:    original f32 weights/scales/shifts for the JAX reference.
    """
    dims = [input_features,
            int(nf * ratio[0]), int(nf * ratio[1]),
            nf * ratio[2], nf * ratio[3]]
    kernel_params, raw = {}, {}
    keys = jax.random.split(key, 16)
    ki = 0
    for layer in range(4):
        cin, cout = dims[layer], dims[layer + 1]
        w = 0.2 * jax.random.normal(keys[ki], (cin, cout), jnp.float32); ki += 1
        b = 0.05 * jax.random.normal(keys[ki], (cout,), jnp.float32); ki += 1
        gamma = 1.0 + 0.1 * jax.random.normal(keys[ki], (cout,), jnp.float32); ki += 1
        beta = 0.05 * jnp.ones((cout,), jnp.float32)
        mean = 0.02 * jnp.ones((cout,), jnp.float32)
        var = jnp.ones((cout,), jnp.float32)
        s = gamma / jnp.sqrt(var + BN_EPS)        # eval-mode BN scale
        t = (b - mean) * s + beta                 # eval-mode BN shift (conv bias folded)

        raw[f"w{layer + 1}"] = w
        raw[f"s{layer + 1}"] = s.reshape(1, cout)
        raw[f"t{layer + 1}"] = t.reshape(1, cout)

        kernel_params[f"w{layer + 1}"] = (w * s[None, :]).astype(jnp.bfloat16)
        kernel_params[f"t{layer + 1}"] = t.reshape(1, cout)

    wl = 0.2 * jax.random.normal(keys[ki], (dims[4], 1), jnp.float32); ki += 1
    bl = 0.05 * jnp.ones((1, 1), jnp.float32)
    raw["wl"], raw["bl"] = wl, bl
    kernel_params["wl"] = wl.reshape(1, dims[4])   # row vector for lane reduction
    kernel_params["bl"] = bl
    return kernel_params, raw


def reference(x, w_id, p):
    """Pure-JAX f32 reference mirroring the PyTorch forward (eval-mode BN)."""
    d = jnp.abs(x[:, :, None, :] - x[:, None, :, :])            # (B, N, N, F)
    h = d
    for i in range(1, 5):
        h = jnp.einsum("bijf,fo->bijo", h, p[f"w{i}"])
        h = h * p[f"s{i}"] + p[f"t{i}"]
        h = jnp.where(h > 0, h, NEG_SLOPE * h)
    logits = jnp.einsum("bijf,fo->bijo", h, p["wl"]) + p["bl"]   # (B, N, N, 1)
    logits = logits[..., 0] - w_id[..., 0] * BIG
    sm = jax.nn.softmax(logits, axis=2)                          # softmax over j
    return jnp.concatenate([w_id, sm[..., None]], axis=-1)       # J2 concat


if __name__ == "__main__":
    B, N = 2, 8
    input_features, nf = 32, 16

    key = jax.random.PRNGKey(0)
    kx, kp = jax.random.split(key)
    x = jax.random.normal(kx, (B, N, input_features), jnp.float32)
    w_id = jnp.broadcast_to(jnp.eye(N, dtype=jnp.float32)[None, :, :, None],
                            (B, N, N, 1))
    params, raw = make_params(kp, input_features, nf)

    out = jax.block_until_ready(wcompute_forward(x, w_id, params))
    ref = jax.block_until_ready(reference(x, w_id, raw))

    # bf16 matmul operands + approx reciprocal -> loosened tolerance vs f32 ref.
    np.testing.assert_allclose(np.asarray(out), np.asarray(ref),
                               rtol=5e-2, atol=5e-3)

    print("KERNEL_OK")
</pallas_src>

<mosaic_0001>
module attributes {stable_mosaic.version = 11 : i64} {
  func.func @wcompute_kernel(%arg0: i32, %arg1: i32, %arg2: memref<1x8x32xf32, #tpu.memory_space<vmem>>, %arg3: memref<1x8x32xf32, #tpu.memory_space<vmem>>, %arg4: memref<1x8x8xf32, #tpu.memory_space<vmem>>, %arg5: memref<32x32xbf16, #tpu.memory_space<vmem>>, %arg6: memref<1x32xf32, #tpu.memory_space<vmem>>, %arg7: memref<32x32xbf16, #tpu.memory_space<vmem>>, %arg8: memref<1x32xf32, #tpu.memory_space<vmem>>, %arg9: memref<32x16xbf16, #tpu.memory_space<vmem>>, %arg10: memref<1x16xf32, #tpu.memory_space<vmem>>, %arg11: memref<16x16xbf16, #tpu.memory_space<vmem>>, %arg12: memref<1x16xf32, #tpu.memory_space<vmem>>, %arg13: memref<1x16xf32, #tpu.memory_space<vmem>>, %arg14: memref<1x1xf32, #tpu.memory_space<vmem>>, %arg15: memref<1x8x8xf32, #tpu.memory_space<vmem>>) attributes {dimension_semantics = [#tpu.dimension_semantics<parallel>, #tpu.dimension_semantics<parallel>], iteration_bounds = array<i64: 2, 1>, scalar_prefetch = 0 : i64, scratch_operands = 0 : i64, tpu.core_type = #tpu.core_type<tc>, window_params = [{transform_indices = @transform_0, window_bounds = array<i64: 1, 8, 32>}, {transform_indices = @transform_1, window_bounds = array<i64: 1, 8, 32>}, {transform_indices = @transform_2, window_bounds = array<i64: 1, 8, 8>}, {pipeline_mode = #tpu.pipeline_mode<synchronous>, transform_indices = @transform_3, window_bounds = array<i64: 32, 32>}, {pipeline_mode = #tpu.pipeline_mode<synchronous>, transform_indices = @transform_4, window_bounds = array<i64: 1, 32>}, {pipeline_mode = #tpu.pipeline_mode<synchronous>, transform_indices = @transform_5, window_bounds = array<i64: 32, 32>}, {pipeline_mode = #tpu.pipeline_mode<synchronous>, transform_indices = @transform_6, window_bounds = array<i64: 1, 32>}, {pipeline_mode = #tpu.pipeline_mode<synchronous>, transform_indices = @transform_7, window_bounds = array<i64: 32, 16>}, {pipeline_mode = #tpu.pipeline_mode<synchronous>, transform_indices = @transform_8, window_bounds = array<i64: 1, 16>}, {pipeline_mode = #tpu.pipeline_mode<synchronous>, transform_indices = @transform_9, window_bounds = array<i64: 16, 16>}, {pipeline_mode = #tpu.pipeline_mode<synchronous>, transform_indices = @transform_10, window_bounds = array<i64: 1, 16>}, {pipeline_mode = #tpu.pipeline_mode<synchronous>, transform_indices = @transform_11, window_bounds = array<i64: 1, 16>}, {pipeline_mode = #tpu.pipeline_mode<synchronous>, transform_indices = @transform_12, window_bounds = array<i64: 1, 1>}, {transform_indices = @transform_13, window_bounds = array<i64: 1, 8, 8>}]} {
    %c0 = arith.constant 0 : index
    %c0_0 = arith.constant 0 : index
    %c0_1 = arith.constant 0 : index
    %0 = vector.load %arg2[%c0, %c0_0, %c0_1] : memref<1x8x32xf32, #tpu.memory_space<vmem>>, vector<1x8x32xf32>
    %1 = vector.shape_cast %0 : vector<1x8x32xf32> to vector<8x32xf32>
    %c0_2 = arith.constant 0 : index
    %c0_3 = arith.constant 0 : index
    %c0_4 = arith.constant 0 : index
    %2 = vector.load %arg3[%c0_2, %c0_3, %c0_4] : memref<1x8x32xf32, #tpu.memory_space<vmem>>, vector<1x8x32xf32>
    %3 = vector.shape_cast %2 : vector<1x8x32xf32> to vector<8x32xf32>
    %4 = vector.shape_cast %1 : vector<8x32xf32> to vector<8x1x32xf32>
    %5 = vector.shape_cast %3 : vector<8x32xf32> to vector<1x8x32xf32>
    %6 = vector.broadcast %4 : vector<8x1x32xf32> to vector<8x8x32xf32>
    %7 = vector.broadcast %5 : vector<1x8x32xf32> to vector<8x8x32xf32>
    %8 = arith.subf %6, %7 : vector<8x8x32xf32>
    %9 = math.absf %8 : vector<8x8x32xf32>
    %10 = vector.shape_cast %9 : vector<8x8x32xf32> to vector<64x32xf32>
    %11 = arith.truncf %10 : vector<64x32xf32> to vector<64x32xbf16>
    %c0_5 = arith.constant 0 : index
    %c0_6 = arith.constant 0 : index
    %12 = vector.load %arg5[%c0_5, %c0_6] : memref<32x32xbf16, #tpu.memory_space<vmem>>, vector<32x32xbf16>
    %cst = arith.constant dense<0.000000e+00> : vector<64x32xf32>
    %13 = tpu.matmul %11, %12, %cst {dimension_numbers = #tpu.dot_dimension_numbers<[1], [0], [0], [1], [0, 0, 1, 1], [], []>} : vector<64x32xbf16>, vector<32x32xbf16>, vector<64x32xf32> -> vector<64x32xf32>
    %c0_7 = arith.constant 0 : index
    %c0_8 = arith.constant 0 : index
    %14 = vector.load %arg6[%c0_7, %c0_8] : memref<1x32xf32, #tpu.memory_space<vmem>>, vector<1x32xf32>
    %15 = vector.broadcast %14 : vector<1x32xf32> to vector<64x32xf32>
    %16 = arith.addf %13, %15 : vector<64x32xf32>
    %cst_9 = arith.constant 0.000000e+00 : f32
    %17 = vector.broadcast %cst_9 : f32 to vector<64x32xf32>
    %18 = arith.cmpf ogt, %16, %17 : vector<64x32xf32>
    %cst_10 = arith.constant 0.00999999977 : f32
    %19 = vector.broadcast %cst_10 : f32 to vector<64x32xf32>
    %20 = arith.mulf %19, %16 : vector<64x32xf32>
    %21 = arith.select %18, %16, %20 : vector<64x32xi1>, vector<64x32xf32>
    %22 = arith.truncf %21 : vector<64x32xf32> to vector<64x32xbf16>
    %c0_11 = arith.constant 0 : index
    %c0_12 = arith.constant 0 : index
    %23 = vector.load %arg7[%c0_11, %c0_12] : memref<32x32xbf16, #tpu.memory_space<vmem>>, vector<32x32xbf16>
    %cst_13 = arith.constant dense<0.000000e+00> : vector<64x32xf32>
    %24 = tpu.matmul %22, %23, %cst_13 {dimension_numbers = #tpu.dot_dimension_numbers<[1], [0], [0], [1], [0, 0, 1, 1], [], []>} : vector<64x32xbf16>, vector<32x32xbf16>, vector<64x32xf32> -> vector<64x32xf32>
    %c0_14 = arith.constant 0 : index
    %c0_15 = arith.constant 0 : index
    %25 = vector.load %arg8[%c0_14, %c0_15] : memref<1x32xf32, #tpu.memory_space<vmem>>, vector<1x32xf32>
    %26 = vector.broadcast %25 : vector<1x32xf32> to vector<64x32xf32>
    %27 = arith.addf %24, %26 : vector<64x32xf32>
    %cst_16 = arith.constant 0.000000e+00 : f32
    %28 = vector.broadcast %cst_16 : f32 to vector<64x32xf32>
    %29 = arith.cmpf ogt, %27, %28 : vector<64x32xf32>
    %cst_17 = arith.constant 0.00999999977 : f32
    %30 = vector.broadcast %cst_17 : f32 to vector<64x32xf32>
    %31 = arith.mulf %30, %27 : vector<64x32xf32>
    %32 = arith.select %29, %27, %31 : vector<64x32xi1>, vector<64x32xf32>
    %33 = arith.truncf %32 : vector<64x32xf32> to vector<64x32xbf16>
    %c0_18 = arith.constant 0 : index
    %c0_19 = arith.constant 0 : index
    %34 = vector.load %arg9[%c0_18, %c0_19] : memref<32x16xbf16, #tpu.memory_space<vmem>>, vector<32x16xbf16>
    %cst_20 = arith.constant dense<0.000000e+00> : vector<64x16xf32>
    %35 = tpu.matmul %33, %34, %cst_20 {dimension_numbers = #tpu.dot_dimension_numbers<[1], [0], [0], [1], [0, 0, 1, 1], [], []>} : vector<64x32xbf16>, vector<32x16xbf16>, vector<64x16xf32> -> vector<64x16xf32>
    %c0_21 = arith.constant 0 : index
    %c0_22 = arith.constant 0 : index
    %36 = vector.load %arg10[%c0_21, %c0_22] : memref<1x16xf32, #tpu.memory_space<vmem>>, vector<1x16xf32>
    %37 = vector.broadcast %36 : vector<1x16xf32> to vector<64x16xf32>
    %38 = arith.addf %35, %37 : vector<64x16xf32>
    %cst_23 = arith.constant 0.000000e+00 : f32
    %39 = vector.broadcast %cst_23 : f32 to vector<64x16xf32>
    %40 = arith.cmpf ogt, %38, %39 : vector<64x16xf32>
    %cst_24 = arith.constant 0.00999999977 : f32
    %41 = vector.broadcast %cst_24 : f32 to vector<64x16xf32>
    %42 = arith.mulf %41, %38 : vector<64x16xf32>
    %43 = arith.select %40, %38, %42 : vector<64x16xi1>, vector<64x16xf32>
    %44 = arith.truncf %43 : vector<64x16xf32> to vector<64x16xbf16>
    %c0_25 = arith.constant 0 : index
    %c0_26 = arith.constant 0 : index
    %45 = vector.load %arg11[%c0_25, %c0_26] : memref<16x16xbf16, #tpu.memory_space<vmem>>, vector<16x16xbf16>
    %cst_27 = arith.constant dense<0.000000e+00> : vector<64x16xf32>
    %46 = tpu.matmul %44, %45, %cst_27 {dimension_numbers = #tpu.dot_dimension_numbers<[1], [0], [0], [1], [0, 0, 1, 1], [], []>} : vector<64x16xbf16>, vector<16x16xbf16>, vector<64x16xf32> -> vector<64x16xf32>
    %c0_28 = arith.constant 0 : index
    %c0_29 = arith.constant 0 : index
    %47 = vector.load %arg12[%c0_28, %c0_29] : memref<1x16xf32, #tpu.memory_space<vmem>>, vector<1x16xf32>
    %48 = vector.broadcast %47 : vector<1x16xf32> to vector<64x16xf32>
    %49 = arith.addf %46, %48 : vector<64x16xf32>
    %cst_30 = arith.constant 0.000000e+00 : f32
    %50 = vector.broadcast %cst_30 : f32 to vector<64x16xf32>
    %51 = arith.cmpf ogt, %49, %50 : vector<64x16xf32>
    %cst_31 = arith.constant 0.00999999977 : f32
    %52 = vector.broadcast %cst_31 : f32 to vector<64x16xf32>
    %53 = arith.mulf %52, %49 : vector<64x16xf32>
    %54 = arith.select %51, %49, %53 : vector<64x16xi1>, vector<64x16xf32>
    %c0_32 = arith.constant 0 : index
    %c0_33 = arith.constant 0 : index
    %55 = vector.load %arg13[%c0_32, %c0_33] : memref<1x16xf32, #tpu.memory_space<vmem>>, vector<1x16xf32>
    %56 = vector.broadcast %55 : vector<1x16xf32> to vector<64x16xf32>
    %57 = arith.mulf %54, %56 : vector<64x16xf32>
    %cst_34 = arith.constant dense<0.000000e+00> : vector<64xf32>
    %58 = vector.multi_reduction <add>, %57, %cst_34 [1] : vector<64x16xf32> to vector<64xf32>
    %59 = vector.shape_cast %58 : vector<64xf32> to vector<64x1xf32>
    %60 = vector.shape_cast %59 : vector<64x1xf32> to vector<8x8xf32>
    %c0_35 = arith.constant 0 : index
    %c0_36 = arith.constant 0 : index
    %61 = vector.load %arg14[%c0_35, %c0_36] : memref<1x1xf32, #tpu.memory_space<vmem>>, vector<1x1xf32>
    %62 = vector.broadcast %61 : vector<1x1xf32> to vector<8x8xf32>
    %63 = arith.addf %60, %62 : vector<8x8xf32>
    %c0_37 = arith.constant 0 : index
    %c0_38 = arith.constant 0 : index
    %c0_39 = arith.constant 0 : index
    %64 = vector.load %arg4[%c0_37, %c0_38, %c0_39] : memref<1x8x8xf32, #tpu.memory_space<vmem>>, vector<1x8x8xf32>
    %65 = vector.shape_cast %64 : vector<1x8x8xf32> to vector<8x8xf32>
    %cst_40 = arith.constant 1.000000e+08 : f32
    %66 = vector.broadcast %cst_40 : f32 to vector<8x8xf32>
    %67 = arith.mulf %65, %66 : vector<8x8xf32>
    %68 = arith.subf %63, %67 : vector<8x8xf32>
    %cst_41 = arith.constant dense<0xFF800000> : vector<8xf32>
    %69 = vector.multi_reduction <maximumf>, %68, %cst_41 [1] : vector<8x8xf32> to vector<8xf32>
    %70 = vector.shape_cast %69 : vector<8xf32> to vector<8x1xf32>
    %71 = vector.broadcast %70 : vector<8x1xf32> to vector<8x8xf32>
    %72 = arith.subf %68, %71 : vector<8x8xf32>
    %73 = math.exp %72 : vector<8x8xf32>
    %cst_42 = arith.constant dense<0.000000e+00> : vector<8xf32>
    %74 = vector.multi_reduction <add>, %73, %cst_42 [1] : vector<8x8xf32> to vector<8xf32>
    %75 = vector.shape_cast %74 : vector<8xf32> to vector<8x1xf32>
    %76 = tpu.reciprocal %75 {approx = true} : vector<8x1xf32> -> vector<8x1xf32>
    %77 = vector.broadcast %76 : vector<8x1xf32> to vector<8x8xf32>
    %78 = arith.mulf %73, %77 : vector<8x8xf32>
    %c0_43 = arith.constant 0 : index
    %c0_44 = arith.constant 0 : index
    %c0_45 = arith.constant 0 : index
    %79 = vector.load %arg15[%c0_43, %c0_44, %c0_45] : memref<1x8x8xf32, #tpu.memory_space<vmem>>, vector<1x8x8xf32>
    %80 = vector.shape_cast %79 : vector<1x8x8xf32> to vector<8x8xf32>
    %81 = vector.shape_cast %78 : vector<8x8xf32> to vector<1x8x8xf32>
    tpu.vector_store %arg15[%c0_43, %c0_44, %c0_45], %81 {strides = array<i32>} : memref<1x8x8xf32, #tpu.memory_space<vmem>>, vector<1x8x8xf32>,
    return
  }
  func.func @transform_0(%arg0: i32, %arg1: i32) -> (i32, i32, i32) {
    %c0_i32 = arith.constant 0 : i32
    %c0_i32_0 = arith.constant 0 : i32
    return %arg0, %arg1, %c0_i32 : i32, i32, i32
  }
  func.func @transform_1(%arg0: i32, %arg1: i32) -> (i32, i32, i32) {
    %c0_i32 = arith.constant 0 : i32
    %c0_i32_0 = arith.constant 0 : i32
    %c0_i32_1 = arith.constant 0 : i32
    return %arg0, %c0_i32, %c0_i32_0 : i32, i32, i32
  }
  func.func @transform_2(%arg0: i32, %arg1: i32) -> (i32, i32, i32) {
    %c0_i32 = arith.constant 0 : i32
    %c0_i32_0 = arith.constant 0 : i32
    return %arg0, %arg1, %c0_i32 : i32, i32, i32
  }
  func.func @transform_3(%arg0: i32, %arg1: i32) -> (i32, i32) {
    %c0_i32 = arith.constant 0 : i32
    %c0_i32_0 = arith.constant 0 : i32
    %c0_i32_1 = arith.constant 0 : i32
    return %c0_i32, %c0_i32_0 : i32, i32
  }
  func.func @transform_4(%arg0: i32, %arg1: i32) -> (i32, i32) {
    %c0_i32 = arith.constant 0 : i32
    %c0_i32_0 = arith.constant 0 : i32
    %c0_i32_1 = arith.constant 0 : i32
    return %c0_i32, %c0_i32_0 : i32, i32
  }
  func.func @transform_5(%arg0: i32, %arg1: i32) -> (i32, i32) {
    %c0_i32 = arith.constant 0 : i32
    %c0_i32_0 = arith.constant 0 : i32
    %c0_i32_1 = arith.constant 0 : i32
    return %c0_i32, %c0_i32_0 : i32, i32
  }
  func.func @transform_6(%arg0: i32, %arg1: i32) -> (i32, i32) {
    %c0_i32 = arith.constant 0 : i32
    %c0_i32_0 = arith.constant 0 : i32
    %c0_i32_1 = arith.constant 0 : i32
    return %c0_i32, %c0_i32_0 : i32, i32
  }
  func.func @transform_7(%arg0: i32, %arg1: i32) -> (i32, i32) {
    %c0_i32 = arith.constant 0 : i32
    %c0_i32_0 = arith.constant 0 : i32
    %c0_i32_1 = arith.constant 0 : i32
    return %c0_i32, %c0_i32_0 : i32, i32
  }
  func.func @transform_8(%arg0: i32, %arg1: i32) -> (i32, i32) {
    %c0_i32 = arith.constant 0 : i32
    %c0_i32_0 = arith.constant 0 : i32
    %c0_i32_1 = arith.constant 0 : i32
    return %c0_i32, %c0_i32_0 : i32, i32
  }
  func.func @transform_9(%arg0: i32, %arg1: i32) -> (i32, i32) {
    %c0_i32 = arith.constant 0 : i32
    %c0_i32_0 = arith.constant 0 : i32
    %c0_i32_1 = arith.constant 0 : i32
    return %c0_i32, %c0_i32_0 : i32, i32
  }
  func.func @transform_10(%arg0: i32, %arg1: i32) -> (i32, i32) {
    %c0_i32 = arith.constant 0 : i32
    %c0_i32_0 = arith.constant 0 : i32
    %c0_i32_1 = arith.constant 0 : i32
    return %c0_i32, %c0_i32_0 : i32, i32
  }
  func.func @transform_11(%arg0: i32, %arg1: i32) -> (i32, i32) {
    %c0_i32 = arith.constant 0 : i32
    %c0_i32_0 = arith.constant 0 : i32
    %c0_i32_1 = arith.constant 0 : i32
    return %c0_i32, %c0_i32_0 : i32, i32
  }
  func.func @transform_12(%arg0: i32, %arg1: i32) -> (i32, i32) {
    %c0_i32 = arith.constant 0 : i32
    %c0_i32_0 = arith.constant 0 : i32
    %c0_i32_1 = arith.constant 0 : i32
    return %c0_i32, %c0_i32_0 : i32, i32
  }
  func.func @transform_13(%arg0: i32, %arg1: i32) -> (i32, i32, i32) {
    %c0_i32 = arith.constant 0 : i32
    %c0_i32_0 = arith.constant 0 : i32
    return %arg0, %arg1, %c0_i32 : i32, i32, i32
  }
}

</mosaic_0001>

<bundles_post_ra>
// kernel: tpu_custom_call.1
= control target key start
LH: loop header
LB: loop body
LE: loop exit
PB: predicated region body
PF: predicated region fallthrough
CT: control target
= control target key end

     0   :  { %s2433_s0 = inlined_call_operand.vmem [shape: f32[2,8,32], index: 0, kind: input, shape index: {}]   ;;  %s2434_s1 = inlined_call_operand.hbm [shape: f32[2,8,32], index: 1, kind: input, shape index: {}]   ;;  %s2435_s2 = inlined_call_operand.hbm [shape: f32[2,8,8], index: 2, kind: input, shape index: {}]   ;;  %s2436_s3 = inlined_call_operand.hbm [shape: bf16[32,32], index: 3, kind: input, shape index: {}]   ;;  %s2437_s4 = inlined_call_operand.hbm [shape: f32[1,32], index: 4, kind: input, shape index: {}]   ;;  %s2438_s5 = inlined_call_operand.hbm [shape: bf16[32,32], index: 5, kind: input, shape index: {}]   ;;  %s2439_s6 = inlined_call_operand.hbm [shape: f32[1,32], index: 6, kind: input, shape index: {}]   ;;  %s2440_s7 = inlined_call_operand.vmem [shape: bf16[32,16], index: 7, kind: input, shape index: {}]   ;;  %s2441_s8 = inlined_call_operand.vmem [shape: f32[1,16], index: 8, kind: input, shape index: {}]   ;;  %s2442_s9 = inlined_call_operand.vmem [shape: bf16[16,16], index: 9, kind: input, shape index: {}]   ;;  %s2443_s10 = inlined_call_operand.vmem [shape: f32[1,16], index: 10, kind: input, shape index: {}]   ;;  %s2444_s11 = inlined_call_operand.vmem [shape: f32[1,16], index: 11, kind: input, shape index: {}]   ;;  %s2445_s12 = inlined_call_operand.<no memory space> [shape: f32[1,1], index: 12, kind: input, shape index: {}]   ;;  %s2446_s13 = inlined_call_operand.hbm [shape: f32[2,8,8], index: 13, kind: output, shape index: {}]  }
   0x1   :  { %2455 = sst [smem:[#allocation28_spill]] %s2436_s3  ;;  %v18_v0 = vstv %s2445_s12 }
   0x2   :  { %2456 = sst [smem:[#allocation29_spill]] %s2437_s4  ;;  %19 = vst [vmem:[#allocation2] sm:$0x1] %v18_v0 }
   0x3   :  { %2457 = sst [smem:[#allocation30_spill]] %s2438_s5 }
   0x4   :  { %2458 = sst [smem:[#allocation31_spill]] %s2439_s6 }
   0x5   :  { %2459 = sst [smem:[#allocation32_spill]] %s2444_s11 }
   0x6   :  { %2460 = sst [smem:[#allocation33_spill]] %s2446_s13 }
   0x7   :  { %20 = vsyncpa [#allocation4], 0 }
   0x8   :  { %22 = vsyncpa [#allocation4 + $0x1], 0 }
   0x9   :  { %23 = vsyncpa [#allocation7], 0 }
   0xa   :  { %25 = vsyncpa [#allocation7 + $0x1], 0 }
   0xb   :  { %26 = vsyncpa [#allocation10], 0 }
   0xc   :  { %27 = vsyncpa [#allocation13], 0 }
   0xd   :  { %28 = vsyncpa [#allocation5], 0 }
   0xe   :  { %30 = vsyncpa [#allocation5 + $0x1], 0  ;;  %s2104_s27 = smov 0   ;;  %s2106_s28 = smov 0  }
   0xf   :  { %s2108_s29 = smov 0   ;;  %s2110_s30 = smov 0  }
  0x10   :  { %s2112_s14 = smov 0   ;;  %s2114_s12 = smov 0  }
  0x11 LB: > { %2461 = sst [smem:[#allocation21_spill]] %s2002_s27  ;;  %s2135_s15 = sadd.s32 4294967295, %s2022_s12   ;;  %s2022_s12 = sphi %s2114_s12, %s36_s12   ;;  %s2018_s14 = sphi %s2112_s14, %s2489_s14   ;;  %s2014_s30 = sphi %s2110_s30, %s2485_s30   ;;  %s2010_s29 = sphi %s2108_s29, %s2484_s29   ;;  %s2006_s28 = sphi %s2106_s28, %s2488_s28   ;;  %s2002_s27 = sphi %s2104_s27, %s2487_s27  }
  0x12   : > { %2462 = sst [smem:[#allocation22_spill]] %s2010_s29  ;;  %p1528_p0 = scmp.ge.s32.totalorder %s2022_s12, 1 }
  0x13   : > { %2463 = sst [smem:[#allocation23_spill]] %s2018_s14  ;;  %p97_p1 = scmp.eq.s32.totalorder %s2135_s15, 0 }
  0x14   : > { %p373_p2 = scmp.lt.s32.totalorder %s2022_s12, 3  ;;  %s2464_s3 = sld [smem:[#allocation28_spill]] }
  0x15   : > { %s2024_s20 = smov [#allocation8]   ;;  %p1533_p6 = scmp.ge.s32.totalorder %s2022_s12, 2 }
  0x16   : > { %p2143_p3 = pnand %p1528_p0, %p373_p2  ;;  %s386_s21 = sshll.u32 %s2024_s20, 4  ;;  %s387_s21 = int_to_ptr.vmem [resolvable:$true] %s386_s21 }
  0x17   : > { %s2467_s4 = sld [smem:[#allocation29_spill]]  ;;  %s2025_s26 = smov 64  }
  0x18   : > { %p1624_p4 = pneg %p2143_p3  ;;  %s2026_s16 = smov 4  }
  0x19   : > { %s2027_s17 = smov [#allocation9]   ;;  %s2468_s5 = sld [smem:[#allocation30_spill]] }
  0x1a   : > { %s384_s18 = sshll.u32 %s2464_s3, 4  ;;  %p2151_p5 = pnand %p1624_p4, %p97_p1  ;;  %s385_s18 = int_to_ptr.hbm [resolvable:$true] %s384_s18 }
  0x1b   : > { %s401_s20 = sshll.u32 %s2027_s17, 4  ;;  %s2469_s6 = sld [smem:[#allocation31_spill]]  ;;  %s402_s20 = int_to_ptr.vmem [resolvable:$true] %s401_s20 }
  0x1c   : > { %1627 = dma.hbm_to_vmem [thread:$0]  (!%p2151_p5), %s385_s18, 256, %s387_s21, [#allocation7], %s2025_s26, %s2025_s26, %s2026_s16  }
  0x1d   : > { %s399_s25 = sshll.u32 %s2467_s4, 4  ;;  %s2028_s21 = smov [#allocation11]   ;;  %s400_s25 = int_to_ptr.hbm [resolvable:$true] %s399_s25 }
  0x1e   : > { %1630 = dma.hbm_to_vmem [thread:$0]  (!%p2151_p5), %s400_s25, 16, %s402_s20, [#allocation10]  }
  0x1f   : > { %s410_s11 = sshll.u32 %s2468_s5, 4  ;;  %s412_s4 = sshll.u32 %s2028_s21, 4  ;;  %s411_s11 = int_to_ptr.hbm [resolvable:$true] %s410_s11  ;;  %s413_s4 = int_to_ptr.vmem [resolvable:$true] %s412_s4 }
  0x20   : > { %1633 = dma.hbm_to_vmem [thread:$0]  (!%p2151_p5), %s411_s11, 256, %s413_s4, [#allocation10], %s2025_s26, %s2025_s26, %s2026_s16  }
  0x21   : > { %s425_s18 = sshll.u32 %s2469_s6, 4  ;;  %s2029_s3 = smov [#allocation12]   ;;  %s426_s18 = int_to_ptr.hbm [resolvable:$true] %s425_s18 }
  0x22   : > { %s427_s13 = sshll.u32 %s2029_s3, 4  ;;  %s1527_s25 = sadd.s32 4294967294, %s2022_s12   ;;  %s428_s13 = int_to_ptr.vmem [resolvable:$true] %s427_s13 }
  0x23   : > { %1636 = dma.hbm_to_vmem [thread:$0]  (!%p2151_p5), %s426_s18, 16, %s428_s13, [#allocation13]  }
  0x24   : > { %s48_s17 = sadd.s32 1, %s2018_s14  ;;  %s83_s20 = sadd.s32 1, %s2010_s29 }
  0x25   : > { %p50_p7 = scmp.ge.s32.totalorder %s48_s17, 2  ;;  %p90_p8 = scmp.ne.s32.totalorder %s2010_s29, %s2006_s28 }
  0x26   : > { %p91_p9 = scmp.eq.s32.totalorder %s2022_s12, 0  ;;  %p96_p11 = scmp.ne.s32.totalorder %s2006_s28, %s2002_s27 }
  0x27   : > { %s2491_s17 = smov (%p50_p7, %s48_s17), 0  ;;  %p360_p12 = scmp.eq.s32.totalorder %s2135_s15, 1 }
  0x28   : > { %2470 = sst [smem:[#allocation24_spill]] %s2491_s17  ;;  %p2181_p10 = por %p91_p9, %p90_p8 }
  0x29   : > { %s80_s11 = ssub.s32 %s2018_s14, %s2491_s17  ;;  %p2192_p0 = por %p97_p1, %p96_p11 }
  0x2a   : > { %p81_p13 = scmp.eq.s32.totalorder %s80_s11, 0  ;;  %p2196_p2 = por %p360_p12, %p90_p8 }
  0x2b   : > { %p366_p4 = scmp.eq.s32.totalorder %s1527_s25, 1  ;;  %p1652_p7 = scmp.lt.s32.totalorder %s2022_s12, 2 }
  0x2c   : > { %s2473_s26 = scalar_select %p2196_p2, 1, 0 }
  0x2d   : > { %s2201_s16 = scalar_select %p81_p13, %s2010_s29, %s83_s20  }
  0x2e   : > { %2474 = sst [smem:[#allocation25_spill]] %s2473_s26  ;;  %p2203_p5 = por %p366_p4, %p96_p11 }
  0x2f   : > { %2475 = sst [smem:[#allocation26_spill]] %s2201_s16  ;;  %s466_s24 = sand.u32 1, %s2010_s29  }
  0x30   : > { %s2476_s23 = scalar_select %p2203_p5, 1, 0 }
  0x31   : > { %s1535_s18 = sshll.u32 %s2018_s14, 3  ;;  %s1534_s21 = sshll.u32 %s466_s24, 3 }
  0x32   : > { %2477 = sst [smem:[#allocation27_spill]] %s2476_s23  ;;  %s474_s11 = scalar_lea.hbm %s2434_s1, %s1535_s18 }
  0x33   : > { %s476_s5 = sshll.u32 %s474_s11, 4  ;;  %s470_s6 = scalar_lea.vmem [#allocation3], %s1534_s21  ;;  %s477_s5 = int_to_ptr.hbm [resolvable:$true] %s476_s5 }
  0x34   : > { %s478_s17 = sshll.u32 %s470_s6, 4  ;;  %p1638_p8 = pnand %p1652_p7, %p2181_p10  ;;  %s479_s17 = int_to_ptr.vmem [resolvable:$true] %s478_s17 }
  0x35   : > { %s494_s16 = scalar_lea.hbm %s2435_s2, %s1535_s18  ;;  %s485_s23 = sand.u32 1, %s2022_s12  }
  0x36   : > { %s467_s27 = scalar_lea.sflag [#allocation4], %s466_s24  ;;  %s496_s14 = sshll.u32 %s494_s16, 4  ;;  %s497_s14 = int_to_ptr.hbm [resolvable:$true] %s496_s14 }
  0x37   : > { %1640 = dma.hbm_to_vmem [thread:$0]  (!%p1638_p8), %s477_s5, 128, %s479_s17, %s467_s27  }
  0x38   : > { %s489_s29 = scalar_lea.vmem [#allocation6], %s1534_s21  ;;  %s486_s3 = scalar_lea.sflag [#allocation7], %s485_s23 }
  0x39   : > { %s498_s26 = sshll.u32 %s489_s29, 4  ;;  %507 = sbr.rel (%p2143_p3) target bundleno = 1508 (0x5e4), region = 72  ;;  %s499_s26 = int_to_ptr.vmem [resolvable:$true] %s498_s26 }
  0x3a   : > { %1643 = dma.hbm_to_vmem [thread:$0]  (!%p1638_p8), %s497_s14, 128, %s499_s26, %s486_s3  }
  0x3b   : > { %s2222_s6 = sand.u32 (!%p2143_p3), 1, %s2006_s28  }
  0x3c   : > { %s2225_s4 = sshll.u32 (!%p2143_p3), %s2222_s6, 3  ;;  %s510_s5 = scalar_lea.sflag (!%p2143_p3), [#allocation4], %s2222_s6 }
  0x3d   : > { %s513_s27 = scalar_lea.vmem (!%p2143_p3), [#allocation3], %s2225_s4 }
  0x3e   : > { %1977 = dma.done.wait (%p2192_p0), %s510_s5, 128  }
  0x3f   : > { %1979 = vsyncadd (%p2192_p0), %s510_s5, 4294967168  ;;  %s519_s29 = sand.u32 1, %s2135_s15   ;;  %s523_s19 = scalar_lea.vmem [#allocation6], %s2225_s4 }
  0x40   : > { %s520_s14 = scalar_lea.sflag [#allocation7], %s519_s29 }
  0x41   : > { %1981 = dma.done.wait (%p2192_p0), %s520_s14, 128  }
  0x42   : > { %1983 = vsyncadd (%p2192_p0), %s520_s14, 4294967168 }
  0x43   : > { %1985 = dma.done.wait (%p97_p1), [#allocation7], 256  }
  0x44   : > { %1987 = vsyncadd (%p97_p1), [#allocation7], 4294967040 }
  0x45   : > { %1989 = dma.done.wait (%p97_p1), [#allocation10], 272  }
  0x46   : > { %1991 = vsyncadd (%p97_p1), [#allocation10], 4294967024 }
  0x47   : > { %1993 = dma.done.wait (%p97_p1), [#allocation13], 16  }
  0x48   : > { %1995 = vsyncadd (%p97_p1), [#allocation13], 4294967280  ;;  %p599_p3 = scmp.lt.s32.totalorder %s2014_s30, 1  ;;  %v1596_v1 = vld [vmem:[#allocation8 + $0x8] sm:$0xff]  ;;  %v1595_v6 = vld [vmem:[#allocation8] sm:$0xff]  ;;  %vm673_vm0 = vcmask 261120  }
  0x49   : > { %v608_v3 = vld [vmem:[%s513_s27] sm:$0xff]  ;;  %692 = vmatpush.bf16.msra.mxu0 %v1596_v1  ;;  %v1597_v41 = vld [vmem:[#allocation11] sm:$0xff]  ;;  %v1720_v43 = vld [vmem:[#allocation9] ss:$0 sm:$0xff]  ;;  %s2478_s14 = sld [smem:[#allocation32_spill]]  ;;  %s1354_s18 = scalar_lea.sflag [#allocation5], %s2222_s6 }
  0x4a   : > { %s600_s17 = scalar_select %p599_p3, %s2014_s30, 1  ;;  %v1598_v40 = vld [vmem:[#allocation11 + $0x8] sm:$0xff] }
  0x4b   : > { %781 = vmatpush.bf16.msra.mxu1 %v1598_v40  ;;  %s2479_s26 = sld [smem:[#allocation33_spill]] }
  0x4c   : > { %s1546_s22 = sshll.u32 %s600_s17, 3 }
  0x4d   : > { %s605_s23 = scalar_lea.vmem %s2433_s0, %s1546_s22  ;;  %693 = vmatpush.bf16.msra.mxu0 %v1595_v6 }
  0x4e   : > { %v607_v2 = vld [vmem:[%s605_s23] sm:$0xff] }
  0x4f   : > { %v610_v4 = vrot.slane %v607_v2, 1  ;;  %v617_v5 = vperm.slane %v607_v2, 0  ;;  %v611_v12 = vrot.slane %v607_v2, 2  ;;  %v612_v13 = vrot.slane %v607_v2, 3  ;;  %782 = vmatpush.bf16.msra.mxu1 %v1597_v41 }
  0x50   : > { %v613_v22 = vrot.slane %v607_v2, 4  ;;  %v614_v23 = vrot.slane %v607_v2, 5  ;;  %v615_v31 = vrot.slane %v607_v2, 6  ;;  %v616_v32 = vrot.slane %v607_v2, 7 }
  0x51   : > { %v618_v7 = vperm.slane %v610_v4, 0  ;;  %v633_v8 = vsub.f32 %v617_v5, %v608_v3  ;;  %v619_v15 = vperm.slane %v611_v12, 0  ;;  %v620_v16 = vperm.slane %v612_v13, 0  ;;  %s1944_s25 = scalar_lea.hbm %s2479_s26, 16 }
  0x52   : > { %v621_v24 = vperm.slane %v613_v22, 0  ;;  %v622_v25 = vperm.slane %v614_v23, 0  ;;  %v623_v33 = vperm.slane %v615_v31, 0  ;;  %v624_v34 = vperm.slane %v616_v32, 0 }
  0x53   : > { %v634_v9 = vsub.f32 %v618_v7, %v608_v3  ;;  %v641_v10 = vand.u32 2147483647, %v633_v8  ;;  %v635_v17 = vsub.f32 %v619_v15, %v608_v3  ;;  %v636_v18 = vsub.f32 %v620_v16, %v608_v3  ;;  %v1600_v15 = vld [vmem:[%s2440_s7 + $0x8] sm:$0xff]  ;;  %v1599_v16 = vld [vmem:[%s2440_s7] sm:$0xff] }
  0x54   : > { %v637_v26 = vsub.f32 %v621_v24, %v608_v3  ;;  %v638_v27 = vsub.f32 %v622_v25, %v608_v3  ;;  %v639_v35 = vsub.f32 %v623_v33, %v608_v3  ;;  %v640_v36 = vsub.f32 %v624_v34, %v608_v3  ;;  %870 = vmatpush.bf16.msra.mxu2 %v1600_v15 }
  0x55   : > { %v642_v11 = vand.u32 2147483647, %v634_v9  ;;  %v643_v19 = vand.u32 2147483647, %v635_v17  ;;  %v644_v20 = vand.u32 2147483647, %v636_v18 }
  0x56   : > { %v645_v28 = vand.u32 2147483647, %v637_v26  ;;  %v646_v29 = vand.u32 2147483647, %v638_v27  ;;  %v647_v37 = vand.u32 2147483647, %v639_v35 }
  0x57   : > { %v649_v14 = vpack.c.bf16 %v642_v11, %v641_v10  ;;  %v650_v21 = vpack.c.bf16 %v644_v20, %v643_v19  ;;  %v648_v38 = vand.u32 2147483647, %v640_v36  ;;  %v1721_v18 = vld [vmem:[#allocation12] ss:$0 sm:$0xff] }
  0x58   : > { %v651_v30 = vpack.c.bf16 %v646_v29, %v645_v28  ;;  %871 = vmatpush.bf16.msra.mxu2 %v1599_v16 }
  0x59   : > { %1555 = vmatmul.msk.bf16.vlgmr.msra.gmra.mxu0 %vm673_vm0, %v649_v14  ;;  %v652_v39 = vpack.c.bf16 %v648_v38, %v647_v37 }
  0x69   : > { %1556 = vmatmul.msk.bf16.gmra.mxu0 %vm673_vm0, %v650_v21 }
  0x79   : > { %1557 = vmatmul.msk.bf16.gmra.mxu0 %vm673_vm0, %v651_v30 }
  0x89   : > { %1558 = vmatmul.msk.bf16.gmra.mxu0 %vm673_vm0, %v652_v39 }
  0xd6   : > { %v695_v42 = vpop.f32.mrf.mxu0 }
  0xd7   : > { %v696_v44 = vadd.f32 %v1720_v43, %v695_v42 }
  0xd9   : > { %v723_v46 = vmul.f32 0.01, %v696_v44  ;;  %vm715_vm1 = vcmp.gt.f32.partialorder %v696_v44, 0.0 }
  0xdb   : > { %v731_v49 = vsel %vm715_vm1, %v696_v44, %v723_v46 }
  0xde   : > { %v697_v45 = vpop.f32.mrf.mxu0 }
  0xdf   : > { %v698_v47 = vadd.f32 %v1720_v43, %v697_v45 }
  0xe1   : > { %vm716_vm2 = vcmp.gt.f32.partialorder %v698_v47, 0.0  ;;  %v724_v48 = vmul.f32 0.01, %v698_v47 }
  0xe3   : > { %v732_v50 = vsel %vm716_vm2, %v698_v47, %v724_v48 }
  0xe4   : > { %v739_v51 = vpack.c.bf16 %v732_v50, %v731_v49 }
  0xe6   : > { %v700_v52 = vpop.f32.mrf.mxu0  ;;  %1567 = vmatmul.msk.bf16.vlgmr.msra.gmra.mxu1 %vm673_vm0, %v739_v51 }
  0xe7   : > { %v701_v53 = vadd.f32 %v1720_v43, %v700_v52 }
  0xe9   : > { %v725_v55 = vmul.f32 0.01, %v701_v53  ;;  %vm717_vm3 = vcmp.gt.f32.partialorder %v701_v53, 0.0 }
  0xeb   : > { %v733_v58 = vsel %vm717_vm3, %v701_v53, %v725_v55 }
  0xee   : > { %v702_v54 = vpop.f32.mrf.mxu0 }
  0xef   : > { %v703_v56 = vadd.f32 %v1720_v43, %v702_v54  ;;  %v1601_v54 = vld [vmem:[%s2442_s9] sm:$0xff] }
  0xf0   : > { %953 = vmatpush.bf16.msra.mxu3 %v1601_v54 }
  0xf1   : > { %vm718_vm4 = vcmp.gt.f32.partialorder %v703_v56, 0.0  ;;  %v726_v57 = vmul.f32 0.01, %v703_v56 }
  0xf3   : > { %v734_v59 = vsel %vm718_vm4, %v703_v56, %v726_v57  ;;  %v2280_v56 = vld [vmem:[%s2441_s8] ss:$0 sm:$0xff] }
  0xf4   : > { %v740_v60 = vpack.c.bf16 %v734_v59, %v733_v58 }
  0xf6   : > { %v705_v61 = vpop.f32.mrf.mxu0  ;;  %1568 = vmatmul.msk.bf16.gmra.mxu1 %vm673_vm0, %v740_v60 }
  0xf7   : > { %v706_v62 = vadd.f32 %v1720_v43, %v705_v61 }
  0xf9   : > { %v727_v0 = vmul.f32 0.01, %v706_v62  ;;  %vm719_vm5 = vcmp.gt.f32.partialorder %v706_v62, 0.0 }
  0xfb   : > { %v735_v3 = vsel %vm719_vm5, %v706_v62, %v727_v0 }
  0xfe   : > { %v707_v63 = vpop.f32.mrf.mxu0 }
  0xff   : > { %v708_v1 = vadd.f32 %v1720_v43, %v707_v63 }
 0x101   : > { %vm720_vm6 = vcmp.gt.f32.partialorder %v708_v1, 0.0  ;;  %v728_v2 = vmul.f32 0.01, %v708_v1 }
 0x103   : > { %v736_v4 = vsel %vm720_vm6, %v708_v1, %v728_v2 }
 0x104   : > { %v741_v5 = vpack.c.bf16 %v736_v4, %v735_v3 }
 0x106   : > { %v710_v6 = vpop.f32.mrf.mxu0  ;;  %1569 = vmatmul.msk.bf16.gmra.mxu1 %vm673_vm0, %v741_v5 }
 0x107   : > { %v711_v7 = vadd.f32 %v1720_v43, %v710_v6 }
 0x109   : > { %v729_v9 = vmul.f32 0.01, %v711_v7  ;;  %vm721_vm7 = vcmp.gt.f32.partialorder %v711_v7, 0.0 }
 0x10b   : > { %v737_v12 = vsel %vm721_vm7, %v711_v7, %v729_v9 }
 0x10e   : > { %v712_v8 = vpop.f32.mrf.mxu0 }
 0x10f   : > { %v713_v10 = vadd.f32 %v1720_v43, %v712_v8 }
 0x111   : > { %vm722_vm8 = vcmp.gt.f32.partialorder %v713_v10, 0.0  ;;  %v730_v11 = vmul.f32 0.01, %v713_v10 }
 0x113   : > { %v738_v13 = vsel %vm722_vm8, %v713_v10, %v730_v11  ;;  %v1054_v11 = vlaneseq }
 0x114   : > { %v742_v14 = vpack.c.bf16 %v738_v13, %v737_v12  ;;  %v1723_v12 = vld [vmem:[#allocation2] ss:$0 sm:$0xff] }
 0x115   : > { %v1050_v13 = vld [vmem:[%s523_s19] sm:$0xff]  ;;  %v1055_v15 = vshrl.u32 %v1054_v11, 7  ;;  %s1592_s19 = sshll.u32 %s2014_s30, 3  ;;  %s598_s30 = scalar_lea.vmem [#allocation14], %s2225_s4 }
 0x116   : > { %1570 = vmatmul.msk.bf16.gmra.mxu1 %vm673_vm0, %v742_v14  ;;  %v2030_v14 = vmov 0   ;;  %v1051_v16 = vmul.f32 1e+08, %v1050_v13  ;;  %s1365_s16 = scalar_lea.hbm %s2479_s26, %s1592_s19  ;;  %s1367_s15 = sshll.u32 %s598_s30, 4  ;;  %s1368_s15 = int_to_ptr.vmem [resolvable:$true] %s1367_s15 }
 0x117   : > { %1713 = vset.pattern.permute.xlu1 %v2030_v14  ;;  %1714 = vset.pattern.permute.xlu0 %v1055_v15  ;;  %s1369_s24 = sshll.u32 %s1365_s16, 4  ;;  %s1370_s24 = int_to_ptr.hbm [resolvable:$true] %s1369_s24 }
 0x118   : > { %1039 = vperm.xlu1 %1713, %v1723_v12   ;;  %1715 = vset.pattern.permute.xlu2 %v1055_v15  ;;  %s1938_s21 = sshra.s32 %s1370_s24, 4  ;;  %s1939_s21 = int_to_ptr.hbm [resolvable:$true] %s1938_s21 }
 0x119   : > { %s1940_s4 = scalar_lea.hbm %s1939_s21, 8  ;;  %p1945_p11 = scmp.lt.s32.totalorder %s1939_s21, %s2479_s26 }
 0x11a   : > { %p1941_p1 = scmp.ne.s32.totalorder %s1939_s21, %s1940_s4  ;;  %p1946_p12 = scmp.lt.s32.totalorder %s1944_s25, %s1940_s4 }
 0x11c   : > { %p1942_p9 = pnand %p1941_p1, %p2196_p2  ;;  %p1947_p13 = por %p1946_p12, %p1945_p11 }
 0x11e   : > { %p1943_p10 = pneg %p1942_p9 }
 0x120   : > { %1716 = vset.pattern.permute.xlu1 %v1055_v15  ;;  %p1948_p0 = pnand %p1947_p13, %p1943_p10 }
 0x163   : > { %v784_v17 = vpop.f32.mrf.mxu1 }
 0x164   : > { %v785_v19 = vadd.f32 %v1721_v18, %v784_v17 }
 0x166   : > { %v812_v21 = vmul.f32 0.01, %v785_v19  ;;  %vm804_vm9 = vcmp.gt.f32.partialorder %v785_v19, 0.0 }
 0x168   : > { %v820_v24 = vsel %vm804_vm9, %v785_v19, %v812_v21  ;;  %v1053_v19 = vperm.slane %v1051_v16, 0 }
 0x16a   : > { %1058 = vperm.xlu0 %1714, %v1053_v19  }
 0x16b   : > { %v786_v20 = vpop.f32.mrf.mxu1 }
 0x16c   : > { %v787_v22 = vadd.f32 %v1721_v18, %v786_v20  ;;  %v1060_v20 = vperm.slane %v1051_v16, 1 }
 0x16e   : > { %vm805_vm10 = vcmp.gt.f32.partialorder %v787_v22, 0.0  ;;  %v813_v23 = vmul.f32 0.01, %v787_v22  ;;  %1065 = vperm.xlu2 %1715, %v1060_v20  }
 0x170   : > { %v821_v25 = vsel %vm805_vm10, %v787_v22, %v813_v23 }
 0x171   : > { %v828_v26 = vpack.c.bf16 %v821_v25, %v820_v24 }
 0x173   : > { %v789_v27 = vpop.f32.mrf.mxu1  ;;  %1579 = vmatmul.msk.bf16.vlgmr.msra.gmra.mxu2 %vm673_vm0, %v828_v26 }
 0x174   : > { %v790_v28 = vadd.f32 %v1721_v18, %v789_v27  ;;  %v1081_v27 = vperm.slane %v1051_v16, 4 }
 0x176   : > { %v814_v30 = vmul.f32 0.01, %v790_v28  ;;  %vm806_vm11 = vcmp.gt.f32.partialorder %v790_v28, 0.0  ;;  %1086 = vperm.xlu1 %1716, %v1081_v27  }
 0x178   : > { %v822_v33 = vsel %vm806_vm11, %v790_v28, %v814_v30  ;;  %v1067_v30 = vperm.slane %v1051_v16, 2 }
 0x17a   : > { %1072 = vperm.xlu2 %1715, %v1067_v30  }
 0x17b   : > { %v791_v29 = vpop.f32.mrf.mxu1 }
 0x17c   : > { %v792_v31 = vadd.f32 %v1721_v18, %v791_v29  ;;  %v1074_v29 = vperm.slane %v1051_v16, 3 }
 0x17e   : > { %vm807_vm12 = vcmp.gt.f32.partialorder %v792_v31, 0.0  ;;  %v815_v32 = vmul.f32 0.01, %v792_v31  ;;  %1079 = vperm.xlu0 %1714, %v1074_v29  }
 0x180   : > { %v823_v34 = vsel %vm807_vm12, %v792_v31, %v815_v32  ;;  %v1095_v32 = vperm.slane %v1051_v16, 6 }
 0x181   : > { %v829_v35 = vpack.c.bf16 %v823_v34, %v822_v33  ;;  %v1102_v34 = vperm.slane %v1051_v16, 7 }
 0x182   : > { %1100 = vperm.xlu1 %1716, %v1095_v32  }
 0x183   : > { %v794_v36 = vpop.f32.mrf.mxu1  ;;  %1580 = vmatmul.msk.bf16.gmra.mxu2 %vm673_vm0, %v829_v35  ;;  %v1088_v35 = vperm.slane %v1051_v16, 5 }
 0x184   : > { %v795_v37 = vadd.f32 %v1721_v18, %v794_v36 }
 0x185   : > { %1093 = vperm.xlu2 %1715, %v1088_v35  }
 0x186   : > { %v816_v39 = vmul.f32 0.01, %v795_v37  ;;  %vm808_vm13 = vcmp.gt.f32.partialorder %v795_v37, 0.0  ;;  %1107 = vperm.xlu0 %1714, %v1102_v34  }
 0x188   : > { %v824_v42 = vsel %vm808_vm13, %v795_v37, %v816_v39 }
 0x18a   : > { %1717 = vset.pattern.permute.xlu1 %v2030_v14 }
 0x18b   : > { %v796_v38 = vpop.f32.mrf.mxu1 }
 0x18c   : > { %v797_v40 = vadd.f32 %v1721_v18, %v796_v38 }
 0x18d   : > { %1718 = vset.pattern.permute.xlu2 %v2030_v14 }
 0x18e   : > { %vm809_vm14 = vcmp.gt.f32.partialorder %v797_v40, 0.0  ;;  %v817_v41 = vmul.f32 0.01, %v797_v40  ;;  %1719 = vset.pattern.permute.xlu0 %v2030_v14 }
 0x190   : > { %v825_v43 = vsel %vm809_vm14, %v797_v40, %v817_v41 }
 0x191   : > { %v830_v44 = vpack.c.bf16 %v825_v43, %v824_v42  ;;  %v1724_v42 = vld [vmem:[%s2443_s10] ss:$0 sm:$0xff] }
 0x193   : > { %v799_v45 = vpop.f32.mrf.mxu1  ;;  %1581 = vmatmul.msk.bf16.gmra.mxu2 %vm673_vm0, %v830_v44 }
 0x194   : > { %v800_v46 = vadd.f32 %v1721_v18, %v799_v45  ;;  %v1725_v45 = vld [vmem:[%s2478_s14] ss:$0 sm:$0xff] }
 0x196   : > { %v818_v48 = vmul.f32 0.01, %v800_v46  ;;  %vm810_vm15 = vcmp.gt.f32.partialorder %v800_v46, 0.0 }
 0x198   : > { %v826_v51 = vsel %vm810_vm15, %v800_v46, %v818_v48 }
 0x19b   : > { %v801_v47 = vpop.f32.mrf.mxu1 }
 0x19c   : > { %v802_v49 = vadd.f32 %v1721_v18, %v801_v47 }
 0x19e   : > { %vm811_vm1 = vcmp.gt.f32.partialorder %v802_v49, 0.0  ;;  %v819_v50 = vmul.f32 0.01, %v802_v49 }
 0x1a0   : > { %v827_v52 = vsel %vm811_vm1, %v802_v49, %v819_v50 }
 0x1a1   : > { %v831_v53 = vpack.c.bf16 %v827_v52, %v826_v51 }
 0x1a3   : > { %1582 = vmatmul.msk.bf16.gmra.mxu2 %vm673_vm0, %v831_v53  ;;  %vm933_vm0 = vcmask 130048  }
 0x1dc   : > { %v1059_v29 = vpop.permute.xlu0 %1058 }
 0x1f0   : > { %v1080_v30 = vpop.permute.xlu0 %1079 }
 0x1f6   : > { %v873_v55 = vpop.f32.mrf.mxu2 }
 0x1f7   : > { %v874_v57 = vadd.f32 %v2280_v56, %v873_v55 }
 0x1f8   : > { %v1108_v32 = vpop.permute.xlu0 %1107 }
 0x1f9   : > { %v901_v59 = vmul.f32 0.01, %v874_v57  ;;  %vm893_vm2 = vcmp.gt.f32.partialorder %v874_v57, 0.0 }
 0x1fb   : > { %v909_v62 = vsel %vm893_vm2, %v874_v57, %v901_v59 }
 0x1fe   : > { %v875_v58 = vpop.f32.mrf.mxu2 }
 0x1ff   : > { %v876_v60 = vadd.f32 %v2280_v56, %v875_v58 }
 0x201   : > { %vm894_vm3 = vcmp.gt.f32.partialorder %v876_v60, 0.0  ;;  %v902_v61 = vmul.f32 0.01, %v876_v60 }
 0x203   : > { %v910_v63 = vsel %vm894_vm3, %v876_v60, %v902_v61  ;;  %vm1167_vm3 = vcmask 1041409  }
 0x204   : > { %v917_v0 = vpack.c.bf16 %v910_v63, %v909_v62 }
 0x206   : > { %v878_v1 = vpop.f32.mrf.mxu2  ;;  %1587 = vmatmul.msk.bf16.vlgmr.msra.gmra.mxu3 %vm933_vm0, %v917_v0 }
 0x207   : > { %v879_v2 = vadd.f32 %v2280_v56, %v878_v1 }
 0x209   : > { %v903_v4 = vmul.f32 0.01, %v879_v2  ;;  %vm895_vm4 = vcmp.gt.f32.partialorder %v879_v2, 0.0 }
 0x20b   : > { %v911_v7 = vsel %vm895_vm4, %v879_v2, %v903_v4  ;;  %vm1171_vm4 = vcmask 1043459  }
 0x20e   : > { %v880_v3 = vpop.f32.mrf.mxu2 }
 0x20f   : > { %v881_v5 = vadd.f32 %v2280_v56, %v880_v3 }
 0x211   : > { %vm896_vm5 = vcmp.gt.f32.partialorder %v881_v5, 0.0  ;;  %v904_v6 = vmul.f32 0.01, %v881_v5 }
 0x213   : > { %v912_v8 = vsel %vm896_vm5, %v881_v5, %v904_v6  ;;  %vm1173_vm5 = vcmask 1044484  }
 0x214   : > { %v918_v9 = vpack.c.bf16 %v912_v8, %v911_v7 }
 0x216   : > { %v883_v10 = vpop.f32.mrf.mxu2  ;;  %1588 = vmatmul.msk.bf16.gmra.mxu3 %vm933_vm0, %v918_v9 }
 0x217   : > { %v884_v17 = vadd.f32 %v2280_v56, %v883_v10 }
 0x219   : > { %v905_v21 = vmul.f32 0.01, %v884_v17  ;;  %vm897_vm6 = vcmp.gt.f32.partialorder %v884_v17, 0.0 }
 0x21b   : > { %v913_v24 = vsel %vm897_vm6, %v884_v17, %v905_v21  ;;  %vm1175_vm6 = vcmask 1045509  }
 0x21e   : > { %v885_v18 = vpop.f32.mrf.mxu2 }
 0x21f   : > { %v886_v22 = vadd.f32 %v2280_v56, %v885_v18 }
 0x221   : > { %vm898_vm7 = vcmp.gt.f32.partialorder %v886_v22, 0.0  ;;  %v906_v23 = vmul.f32 0.01, %v886_v22 }
 0x223   : > { %v914_v25 = vsel %vm898_vm7, %v886_v22, %v906_v23  ;;  %vm1177_vm7 = vcmask 1046534  }
 0x224   : > { %v919_v26 = vpack.c.bf16 %v914_v25, %v913_v24 }
 0x226   : > { %v888_v28 = vpop.f32.mrf.mxu2  ;;  %1589 = vmatmul.msk.bf16.gmra.mxu3 %vm933_vm0, %v919_v26 }
 0x227   : > { %v889_v31 = vadd.f32 %v2280_v56, %v888_v28 }
 0x229   : > { %v907_v36 = vmul.f32 0.01, %v889_v31  ;;  %vm899_vm8 = vcmp.gt.f32.partialorder %v889_v31, 0.0 }
 0x22b   : > { %v915_v39 = vsel %vm899_vm8, %v889_v31, %v907_v36  ;;  %v1040_v31 = vpop.permute.xlu1 %1039  ;;  %vm1179_vm8 = vcmask 1047559  }
 0x22e   : > { %v890_v33 = vpop.f32.mrf.mxu2 }
 0x22f   : > { %v891_v37 = vadd.f32 %v2280_v56, %v890_v33  ;;  %v1066_v33 = vpop.permute.xlu2 %1065 }
 0x231   : > { %vm900_vm9 = vcmp.gt.f32.partialorder %v891_v37, 0.0  ;;  %v908_v38 = vmul.f32 0.01, %v891_v37 }
 0x233   : > { %v916_v40 = vsel %vm900_vm9, %v891_v37, %v908_v38  ;;  %v1087_v34 = vpop.permute.xlu1 %1086  ;;  %vm1182_vm9 = vcmask 64512  }
 0x234   : > { %v920_v41 = vpack.c.bf16 %v916_v40, %v915_v39 }
 0x236   : > { %1590 = vmatmul.msk.bf16.gmra.mxu3 %vm933_vm0, %v920_v41 }
 0x237   : > { %v1073_v38 = vpop.permute.xlu2 %1072 }
 0x23b   : > { %v1101_v39 = vpop.permute.xlu1 %1100 }
 0x289   : > { %v955_v43 = vpop.f32.mrf.mxu3 }
 0x28a   : > { %v956_v44 = vadd.f32 %v1724_v42, %v955_v43  ;;  %v1094_v43 = vpop.permute.xlu2 %1093 }
 0x28c   : > { %vm975_vm10 = vcmp.gt.f32.partialorder %v956_v44, 0.0  ;;  %v983_v46 = vmul.f32 0.01, %v956_v44 }
 0x28e   : > { %v991_v47 = vsel %vm975_vm10, %v956_v44, %v983_v46 }
 0x28f   : > { %v1003_v48 = vmul.f32 %v1725_v45, %v991_v47 }
 0x291   : > { %v957_v49 = vpop.f32.mrf.mxu3  ;;  %v1011_v50 = vsel %vm933_vm0, %v1003_v48, 0.0 }
 0x292   : > { %v958_v51 = vadd.f32 %v1724_v42, %v957_v49  ;;  %1012 = vadd.xlane.f32.xlu0 %v1011_v50 }
 0x294   : > { %vm976_vm11 = vcmp.gt.f32.partialorder %v958_v51, 0.0  ;;  %v984_v52 = vmul.f32 0.01, %v958_v51 }
 0x296   : > { %v992_v53 = vsel %vm976_vm11, %v958_v51, %v984_v52 }
 0x297   : > { %v1004_v54 = vmul.f32 %v1725_v45, %v992_v53 }
 0x299   : > { %v960_v55 = vpop.f32.mrf.mxu3  ;;  %v1014_v56 = vsel %vm933_vm0, %v1004_v54, 0.0 }
 0x29a   : > { %v961_v57 = vadd.f32 %v1724_v42, %v960_v55  ;;  %1015 = vadd.xlane.f32.xlu0 %v1014_v56 }
 0x29c   : > { %vm977_vm12 = vcmp.gt.f32.partialorder %v961_v57, 0.0  ;;  %v985_v58 = vmul.f32 0.01, %v961_v57 }
 0x29e   : > { %v993_v59 = vsel %vm977_vm12, %v961_v57, %v985_v58 }
 0x29f   : > { %v1005_v60 = vmul.f32 %v1725_v45, %v993_v59 }
 0x2a1   : > { %v962_v61 = vpop.f32.mrf.mxu3  ;;  %v1017_v62 = vsel %vm933_vm0, %v1005_v60, 0.0 }
 0x2a2   : > { %v963_v63 = vadd.f32 %v1724_v42, %v962_v61  ;;  %1018 = vadd.xlane.f32.xlu1 %v1017_v62 }
 0x2a4   : > { %vm978_vm13 = vcmp.gt.f32.partialorder %v963_v63, 0.0  ;;  %v986_v0 = vmul.f32 0.01, %v963_v63 }
 0x2a6   : > { %v994_v1 = vsel %vm978_vm13, %v963_v63, %v986_v0 }
 0x2a7   : > { %v1006_v2 = vmul.f32 %v1725_v45, %v994_v1  ;;  %v2333_v1 = vand.u32 127, %v1054_v11 }
 0x2a9   : > { %v965_v3 = vpop.f32.mrf.mxu3  ;;  %v1020_v4 = vsel %vm933_vm0, %v1006_v2, 0.0 }
 0x2aa   : > { %v966_v5 = vadd.f32 %v1724_v42, %v965_v3  ;;  %1021 = vadd.xlane.f32.xlu2 %v1020_v4 }
 0x2ac   : > { %vm979_vm14 = vcmp.gt.f32.partialorder %v966_v5, 0.0  ;;  %v987_v6 = vmul.f32 0.01, %v966_v5 }
 0x2ae   : > { %v995_v7 = vsel %vm979_vm14, %v966_v5, %v987_v6 }
 0x2af   : > { %v1007_v8 = vmul.f32 %v1725_v45, %v995_v7 }
 0x2b1   : > { %v967_v9 = vpop.f32.mrf.mxu3  ;;  %v1023_v10 = vsel %vm933_vm0, %v1007_v8, 0.0 }
 0x2b2   : > { %v968_v12 = vadd.f32 %v1724_v42, %v967_v9  ;;  %1024 = vadd.xlane.f32.xlu2 %v1023_v10 }
 0x2b4   : > { %vm980_vm15 = vcmp.gt.f32.partialorder %v968_v12, 0.0  ;;  %v988_v13 = vmul.f32 0.01, %v968_v12 }
 0x2b6   : > { %v996_v14 = vsel %vm980_vm15, %v968_v12, %v988_v13 }
 0x2b7   : > { %v1008_v15 = vmul.f32 %v1725_v45, %v996_v14 }
 0x2b9   : > { %v970_v16 = vpop.f32.mrf.mxu3  ;;  %v1026_v17 = vsel %vm933_vm0, %v1008_v15, 0.0 }
 0x2ba   : > { %v971_v18 = vadd.f32 %v1724_v42, %v970_v16  ;;  %1027 = vadd.xlane.f32.xlu1 %v1026_v17 }
 0x2bc   : > { %vm981_vm1 = vcmp.gt.f32.partialorder %v971_v18, 0.0  ;;  %v989_v19 = vmul.f32 0.01, %v971_v18 }
 0x2be   : > { %v997_v20 = vsel %vm981_vm1, %v971_v18, %v989_v19 }
 0x2bf   : > { %v1009_v21 = vmul.f32 %v1725_v45, %v997_v20 }
 0x2c1   : > { %v972_v22 = vpop.f32.mrf.mxu3  ;;  %v1029_v23 = vsel %vm933_vm0, %v1009_v21, 0.0 }
 0x2c2   : > { %v973_v24 = vadd.f32 %v1724_v42, %v972_v22  ;;  %1030 = vadd.xlane.f32.xlu2 %v1029_v23 }
 0x2c4   : > { %vm982_vm2 = vcmp.gt.f32.partialorder %v973_v24, 0.0  ;;  %v990_v25 = vmul.f32 0.01, %v973_v24 }
 0x2c6   : > { %v998_v26 = vsel %vm982_vm2, %v973_v24, %v990_v25 }
 0x2c7   : > { %v1010_v27 = vmul.f32 %v1725_v45, %v998_v26 }
 0x2c9   : > { %v1032_v28 = vsel %vm933_vm0, %v1010_v27, 0.0  ;;  %vm1169_vm0 = vcmask 1042434  }
 0x2ca   : > { %1033 = vadd.xlane.f32.xlu0 %v1032_v28 }
 0x305   : > { %v1013_v35 = vpop.xlane.xlu0 %1012 }
 0x306   : > { %v1042_v36 = vadd.f32 %v1040_v31, %v1013_v35 }
 0x308   : > { %v2311_v37 = vsub.f32 %v1042_v36, %v1059_v29 }
 0x30a   : > { %1134 = vperm.xlu1 %1717, %v2311_v37  }
 0x30d   : > { %v1016_v40 = vpop.xlane.xlu0 %1015 }
 0x30e   : > { %v1043_v41 = vadd.f32 %v1040_v31, %v1016_v40 }
 0x310   : > { %v2314_v42 = vsub.f32 %v1043_v41, %v1066_v33 }
 0x312   : > { %1137 = vperm.xlu2 %1718, %v2314_v42  }
 0x315   : > { %v1019_v44 = vpop.xlane.xlu1 %1018 }
 0x316   : > { %v1044_v45 = vadd.f32 %v1040_v31, %v1019_v44 }
 0x318   : > { %v2317_v46 = vsub.f32 %v1044_v45, %v1073_v38 }
 0x31a   : > { %1140 = vperm.xlu1 %1717, %v2317_v46  }
 0x31d   : > { %v1022_v47 = vpop.xlane.xlu2 %1021 }
 0x31e   : > { %v1045_v48 = vadd.f32 %v1040_v31, %v1022_v47 }
 0x320   : > { %v1120_v49 = vsub.f32 %v1045_v48, %v1080_v30 }
 0x322   : > { %1143 = vperm.xlu2 %1718, %v1120_v49  }
 0x325   : > { %v1025_v50 = vpop.xlane.xlu2 %1024 }
 0x326   : > { %v1046_v51 = vadd.f32 %v1040_v31, %v1025_v50 }
 0x328   : > { %v2320_v52 = vsub.f32 %v1046_v51, %v1087_v34 }
 0x32a   : > { %1146 = vperm.xlu1 %1717, %v2320_v52  }
 0x32d   : > { %v1028_v53 = vpop.xlane.xlu1 %1027 }
 0x32e   : > { %v1047_v54 = vadd.f32 %v1040_v31, %v1028_v53 }
 0x330   : > { %v2323_v55 = vsub.f32 %v1047_v54, %v1094_v43 }
 0x332   : > { %1149 = vperm.xlu0 %1719, %v2323_v55  }
 0x335   : > { %v1031_v56 = vpop.xlane.xlu2 %1030 }
 0x336   : > { %v1048_v57 = vadd.f32 %v1040_v31, %v1031_v56 }
 0x338   : > { %v2326_v58 = vsub.f32 %v1048_v57, %v1101_v39 }
 0x33a   : > { %1152 = vperm.xlu2 %1718, %v2326_v58  }
 0x33d   : > { %v1034_v59 = vpop.xlane.xlu0 %1033 }
 0x33e   : > { %v1049_v60 = vadd.f32 %v1040_v31, %v1034_v59 }
 0x340   : > { %v2329_v61 = vsub.f32 %v1049_v60, %v1108_v32 }
 0x342   : > { %1155 = vperm.xlu1 %1717, %v2329_v61  }
 0x36c   : > { %v1138_v63 = vpop.permute.xlu2 %1137 }
 0x36d   : > { %v1160_v5 = vperm.slane %v1138_v63, %v2333_v1 }
 0x37c   : > { %v1135_v62 = vpop.permute.xlu1 %1134  ;;  %v1144_v3 = vpop.permute.xlu2 %1143 }
 0x37d   : > { %v1159_v2 = vperm.slane %v1135_v62, %v2333_v1  ;;  %v1162_v11 = vperm.slane %v1144_v3, %v2333_v1 }
 0x37f   : > { %v1168_v8 = vsel %vm1167_vm3, %v1160_v5, %v1159_v2 }
 0x38c   : > { %v1141_v0 = vpop.permute.xlu1 %1140 }
 0x38d   : > { %v1161_v4 = vperm.slane %v1141_v0, %v2333_v1 }
 0x38f   : > { %v1170_v9 = vsel %vm1169_vm0, %v1161_v4, %v1168_v8 }
 0x390   : > { %v1172_v14 = vsel %vm1171_vm4, %v1162_v11, %v1170_v9 }
 0x394   : > { %v1153_v13 = vpop.permute.xlu2 %1152 }
 0x395   : > { %v1165_v17 = vperm.slane %v1153_v13, %v2333_v1 }
 0x39c   : > { %v1147_v6 = vpop.permute.xlu1 %1146 }
 0x39d   : > { %v1163_v10 = vperm.slane %v1147_v6, %v2333_v1 }
 0x39f   : > { %v1174_v15 = vsel %vm1173_vm5, %v1163_v10, %v1172_v14 }
 0x3a4   : > { %v1150_v7 = vpop.permute.xlu0 %1149 }
 0x3a5   : > { %v1164_v12 = vperm.slane %v1150_v7, %v2333_v1 }
 0x3a7   : > { %v1176_v16 = vsel %vm1175_vm6, %v1164_v12, %v1174_v15 }
 0x3a8   : > { %v1178_v20 = vsel %vm1177_vm7, %v1165_v17, %v1176_v16 }
 0x3b4   : > { %v1156_v18 = vpop.permute.xlu1 %1155 }
 0x3b5   : > { %v1166_v19 = vperm.slane %v1156_v18, %v2333_v1 }
 0x3b7   : > { %v1180_v21 = vsel %vm1179_vm8, %v1166_v19, %v1178_v20 }
 0x3b8   : > { %v1183_v22 = vsel %vm1182_vm9, %v1180_v21, -inf }
 0x3b9   : > { %1184 = vmax.xlane.f32.xlu2 %v1183_v22 }
 0x42c   : > { %v1185_v23 = vpop.xlane.xlu2 %1184 }
 0x42d   : > { %v1188_v24 = vperm.slane %v1185_v23, 1  ;;  %v1187_v25 = vperm.slane %v1185_v23, 0  ;;  %v1190_v28 = vperm.slane %v1185_v23, 3  ;;  %v1189_v29 = vperm.slane %v1185_v23, 2 }
 0x42e   : > { %v1192_v35 = vperm.slane %v1185_v23, 5  ;;  %v1191_v38 = vperm.slane %v1185_v23, 4  ;;  %v1194_v43 = vperm.slane %v1185_v23, 7  ;;  %v1193_v45 = vperm.slane %v1185_v23, 6 }
 0x42f   : > { %v1204_v26 = vsub.f32 %v2314_v42, %v1188_v24  ;;  %v1203_v27 = vsub.f32 %v2311_v37, %v1187_v25  ;;  %v1206_v32 = vsub.f32 %v1120_v49, %v1190_v28  ;;  %v1205_v33 = vsub.f32 %v2317_v46, %v1189_v29 }
 0x430   : > { %v1208_v37 = vsub.f32 %v2323_v55, %v1192_v35  ;;  %v1207_v41 = vsub.f32 %v2320_v52, %v1191_v38  ;;  %v1210_v48 = vsub.f32 %v2329_v61, %v1194_v43  ;;  %v1209_v49 = vsub.f32 %v2326_v58, %v1193_v45 }
 0x431   : > { %v1213_v30 = vmul.f32 1.442695, %v1204_v26  ;;  %v1211_v31 = vmul.f32 1.442695, %v1203_v27  ;;  %v1217_v34 = vmul.f32 1.442695, %v1206_v32 }
 0x432   : > { %v1215_v36 = vmul.f32 1.442695, %v1205_v33  ;;  %v1221_v42 = vmul.f32 1.442695, %v1208_v37  ;;  %v1219_v44 = vmul.f32 1.442695, %v1207_v41 }
 0x433   : > { %1726 = vpow2.f32 %v1213_v30  ;;  %v1225_v50 = vmul.f32 1.442695, %v1210_v48  ;;  %v1223_v51 = vmul.f32 1.442695, %v1209_v49 }
 0x434   : > { %1728 = vpow2.f32 %v1211_v31 }
 0x435   : > { %1730 = vpow2.f32 %v1217_v34 }
 0x436   : > { %1732 = vpow2.f32 %v1215_v36 }
 0x437   : > { %1734 = vpow2.f32 %v1221_v42 }
 0x438   : > { %1736 = vpow2.f32 %v1219_v44 }
 0x439   : > { %v1727_v39 = vpop.eup %1726  ;;  %1738 = vpow2.f32 %v1225_v50 }
 0x43a   : > { %v1729_v40 = vpop.eup %1728  ;;  %1239 = vperm.xlu0 %1719, %v1727_v39   ;;  %1740 = vpow2.f32 %v1223_v51 }
 0x43b   : > { %1236 = vperm.xlu1 %1717, %v1729_v40   ;;  %v2356_v47 = vpop.eup %1730 }
 0x43c   : > { %v1733_v46 = vpop.eup %1732 }
 0x43d   : > { %v1735_v53 = vpop.eup %1734 }
 0x43e   : > { %v1737_v52 = vpop.eup %1736 }
 0x43f   : > { %v1739_v54 = vpop.eup %1738 }
 0x440   : > { %v1741_v55 = vpop.eup %1740 }
 0x442   : > { %1245 = vperm.xlu0 %1719, %v2356_v47  }
 0x443   : > { %1242 = vperm.xlu1 %1717, %v1733_v46  }
 0x44a   : > { %1251 = vperm.xlu0 %1719, %v1735_v53  }
 0x44b   : > { %1248 = vperm.xlu1 %1717, %v1737_v52  }
 0x452   : > { %1257 = vperm.xlu0 %1719, %v1739_v54  }
 0x453   : > { %1254 = vperm.xlu1 %1717, %v1741_v55  }
 0x4ac   : > { %v1240_v56 = vpop.permute.xlu0 %1239 }
 0x4ad   : > { %v1237_v57 = vpop.permute.xlu1 %1236  ;;  %v1260_v61 = vperm.slane %v1240_v56, %v2333_v1 }
 0x4ae   : > { %v1259_v58 = vperm.slane %v1237_v57, %v2333_v1 }
 0x4b0   : > { %v1267_v2 = vsel %vm1167_vm3, %v1260_v61, %v1259_v58 }
 0x4b4   : > { %v1246_v59 = vpop.permute.xlu0 %1245 }
 0x4b5   : > { %v1243_v60 = vpop.permute.xlu1 %1242  ;;  %v1262_v3 = vperm.slane %v1246_v59, %v2333_v1 }
 0x4b6   : > { %v1261_v62 = vperm.slane %v1243_v60, %v2333_v1 }
 0x4b8   : > { %v1268_v4 = vsel %vm1169_vm0, %v1261_v62, %v1267_v2 }
 0x4b9   : > { %v1269_v7 = vsel %vm1171_vm4, %v1262_v3, %v1268_v4 }
 0x4bc   : > { %v1252_v63 = vpop.permute.xlu0 %1251 }
 0x4bd   : > { %v1249_v0 = vpop.permute.xlu1 %1248  ;;  %v1264_v6 = vperm.slane %v1252_v63, %v2333_v1 }
 0x4be   : > { %v1263_v5 = vperm.slane %v1249_v0, %v2333_v1 }
 0x4c0   : > { %v1270_v8 = vsel %vm1173_vm5, %v1263_v5, %v1269_v7 }
 0x4c1   : > { %v1271_v13 = vsel %vm1175_vm6, %v1264_v6, %v1270_v8 }
 0x4c4   : > { %v1258_v9 = vpop.permute.xlu0 %1257 }
 0x4c5   : > { %v1266_v10 = vperm.slane %v1258_v9, %v2333_v1  ;;  %v1255_v11 = vpop.permute.xlu1 %1254 }
 0x4c6   : > { %v1265_v12 = vperm.slane %v1255_v11, %v2333_v1 }
 0x4c8   : > { %v1272_v14 = vsel %vm1177_vm7, %v1265_v12, %v1271_v13 }
 0x4c9   : > { %v1273_v15 = vsel %vm1179_vm8, %v1266_v10, %v1272_v14 }
 0x4ca   : > { %v1275_v16 = vsel %vm1182_vm9, %v1273_v15, 0.0 }
 0x4cb   : > { %1276 = vadd.xlane.f32.xlu1 %v1275_v16 }
 0x53e   : > { %v1277_v17 = vpop.xlane.xlu1 %1276 }
 0x53f   : > { %1742 = vrcp.f32 %v1277_v17 }
 0x545   : > { %v1743_v18 = vpop.eup %1742 }
 0x546   : > { %v1281_v19 = vperm.slane %v1743_v18, 1  ;;  %v1280_v20 = vperm.slane %v1743_v18, 0  ;;  %v1285_v23 = vperm.slane %v1743_v18, 5  ;;  %v1282_v24 = vperm.slane %v1743_v18, 2 }
 0x547   : > { %v1287_v27 = vperm.slane %v1743_v18, 7  ;;  %v1283_v28 = vperm.slane %v1743_v18, 3  ;;  %v1284_v31 = vperm.slane %v1743_v18, 4  ;;  %v1286_v33 = vperm.slane %v1743_v18, 6 }
 0x548   : > { %v1297_v21 = vmul.f32 %v1727_v39, %v1281_v19  ;;  %v1296_v22 = vmul.f32 %v1729_v40, %v1280_v20  ;;  %v1301_v25 = vmul.f32 %v1735_v53, %v1285_v23  ;;  %v1298_v26 = vmul.f32 %v1733_v46, %v1282_v24 }
 0x549   : > { %v1303_v29 = vmul.f32 %v1739_v54, %v1287_v27  ;;  %v1299_v30 = vmul.f32 %v2356_v47, %v1283_v28  ;;  %v1300_v32 = vmul.f32 %v1737_v52, %v1284_v31  ;;  %v1302_v34 = vmul.f32 %v1741_v55, %v1286_v33 }
 0x54a   : > { %1316 = vperm.xlu2 %1718, %v1297_v21   ;;  %1313 = vperm.xlu0 %1719, %v1296_v22  }
 0x552   : > { %1328 = vperm.xlu2 %1718, %v1301_v25   ;;  %1319 = vperm.xlu0 %1719, %v1298_v26  }
 0x55a   : > { %1334 = vperm.xlu2 %1718, %v1303_v29   ;;  %1322 = vperm.xlu0 %1719, %v1299_v30  }
 0x562   : > { %1325 = vperm.xlu0 %1719, %v1300_v32  }
 0x56a   : > { %1331 = vperm.xlu0 %1719, %v1302_v34  }
 0x5a4   : > { %v1317_v38 = vpop.permute.xlu2 %1316 }
 0x5a5   : > { %v1337_v43 = vperm.slane %v1317_v38, %v2333_v1 }
 0x5ac   : > { %v1329_v40 = vpop.permute.xlu2 %1328 }
 0x5ad   : > { %v1341_v51 = vperm.slane %v1329_v40, %v2333_v1 }
 0x5b4   : > { %v1335_v49 = vpop.permute.xlu2 %1334 }
 0x5b5   : > { %v1343_v54 = vperm.slane %v1335_v49, %v2333_v1 }
 0x5bc   : > { %v1314_v35 = vpop.permute.xlu0 %1313 }
 0x5bd   : > { %v1336_v37 = vperm.slane %v1314_v35, %v2333_v1 }
 0x5bf   : > { %v1344_v47 = vsel %vm1167_vm3, %v1337_v43, %v1336_v37 }
 0x5c4   : > { %v1320_v36 = vpop.permute.xlu0 %1319 }
 0x5c5   : > { %v1338_v42 = vperm.slane %v1320_v36, %v2333_v1 }
 0x5c7   : > { %v1345_v46 = vsel %vm1169_vm0, %v1338_v42, %v1344_v47 }
 0x5cc   : > { %v1323_v39 = vpop.permute.xlu0 %1322 }
 0x5cd   : > { %v1339_v44 = vperm.slane %v1323_v39, %v2333_v1 }
 0x5cf   : > { %v1346_v48 = vsel %vm1171_vm4, %v1339_v44, %v1345_v46 }
 0x5d4   : > { %v1326_v41 = vpop.permute.xlu0 %1325 }
 0x5d5   : > { %v1340_v45 = vperm.slane %v1326_v41, %v2333_v1 }
 0x5d7   : > { %v1347_v50 = vsel %vm1173_vm5, %v1340_v45, %v1346_v48 }
 0x5d8   : > { %v1348_v55 = vsel %vm1175_vm6, %v1341_v51, %v1347_v50 }
 0x5dc   : > { %v1332_v53 = vpop.permute.xlu0 %1331 }
 0x5dd   : > { %v1342_v52 = vperm.slane %v1332_v53, %v2333_v1 }
 0x5df   : > { %v1349_v56 = vsel %vm1177_vm7, %v1342_v52, %v1348_v55 }
 0x5e0   : > { %v1350_v57 = vsel %vm1179_vm8, %v1343_v54, %v1349_v56 }
 0x5e1   : > { %1352 = vst.msk [vmem:[%s598_s30] sm:$0xff] %vm1182_vm9, %v1350_v57 }
 0x5e2   : > { %1951 = shalt.err (!%p1948_p0)
}
 0x5e3   : > { %1622 = dma.vmem_to_hbm [thread:$0]  (%p2196_p2), %s1368_s15, 128, %s1370_s24, %s1354_s18  }
 0x5e4 PF: > { %s2481_s6 = sld [smem:[#allocation21_spill]]  ;;  %p1645_p4 = pnand %p1533_p6, %p2203_p5 }
 0x5e6   : > { %p1646_p7 = pneg %p1645_p4 }
 0x5ea   : > { %s1381_s27 = sand.u32 1, %s2481_s6  }
 0x5eb   : > { %s1382_s29 = scalar_lea.sflag [#allocation5], %s1381_s27 }
 0x5ec   : > { %1997 = dma.done.wait (%p1646_p7), %s1382_s29, 128  }
 0x5ed   : > { %1999 = vsyncadd (%p1646_p7), %s1382_s29, 4294967168  ;;  %s36_s12 = sadd.s32 1, %s2022_s12   ;;  %s2483_s14 = sld [smem:[#allocation22_spill]] }
 0x5ee   : > { %p33_p8 = scmp.ge.s32.totalorder %s36_s12, 4   ;;  %s2484_s29 = sld [smem:[#allocation26_spill]] }
 0x5ef   : > { %s2485_s30 = sld [smem:[#allocation23_spill]]  ;;  %s2487_s27 = smov %s2006_s28 }
 0x5f0   : > { %s2486_s19 = sld [smem:[#allocation24_spill]] }
 0x5f2   :  { %35 = sbr.rel (!%p33_p8) target bundleno = 17 (0x11), region = 149 }
 0x5f3   : > { %s2488_s28 = smov %s2483_s14 }
 0x5f6   : > { %s2489_s14 = smov %s2486_s19 }
 0x5f7   :  { %1388 = vsyncpa [#allocation4], 1 }
 0x5f8   :  { %1390 = vsyncpa [#allocation4 + $0x1], 1 }
 0x5f9   :  { %1391 = vsyncpa [#allocation7], 1 }
 0x5fa   :  { %1393 = vsyncpa [#allocation7 + $0x1], 1 }
 0x5fb   :  { %1394 = vsyncpa [#allocation10], 1 }
 0x5fc   :  { %1395 = vsyncpa [#allocation13], 1 }
 0x5fd   :  { %1396 = vsyncpa [#allocation5], 1 }
 0x5fe   :  { %1398 = vsyncpa [#allocation5 + $0x1], 1 }

</bundles_post_ra>
